<compile_context>
chip_gen: v6e
topology: v6e:2x2x1
jax: 0.10.0
libtpu: 0.0.40
codegen_flags: <defaults>
</compile_context>

<pallas_src>
import jax
import jax.numpy as jnp
from jax.experimental import pallas as pl
from jax.experimental.pallas import tpu as pltpu


def _leaky_relu(x, slope=0.1):
    return jnp.where(x > 0, x, slope * x)


def _band_conv(src_ref, w_ref, H):
    """3x3 conv as 3 row-shifted matmuls against banded weights.

    src_ref: (G, H+2, K) H-padded slab (VMEM scratch), K = W*C_in_layer
    w_ref:   (3, K, N)   band weights, N = W*C_out_layer
    returns: (G*H, N) float32 accumulator
    """
    G = src_ref.shape[0]
    K = src_ref.shape[2]
    N = w_ref.shape[2]
    acc = jnp.zeros((G * H, N), jnp.float32)
    for kh in range(3):
        lhs = src_ref[:, kh:kh + H, :].reshape(G * H, K)
        acc = acc + jnp.dot(lhs, w_ref[kh], preferred_element_type=jnp.float32)
    return acc


def spaconv_kernel(x_ref, w1_ref, w2_ref, y_ref, xpad, mpad):
    # x_ref:  (G, H, W*Cin)       lane-flattened images
    # w1_ref: (3, W*Cin,  W*Cout) band weights conv1
    # w2_ref: (3, W*Cout, W*Cout) band weights conv2
    # y_ref:  (G, H, W*Cout)      lane-dense output block
    # xpad:   VMEM (G, H+2, W*Cin)  H-padded input slab
    # mpad:   VMEM (G, H+2, W*Cout) H-padded intermediate slab
    G, H, WCi = x_ref.shape
    WCo = y_ref.shape[2]

    # Zero the 1-row top/bottom borders once.  The interior rows [1:H+1] are
    # fully overwritten every grid step and the border rows are never written
    # again, so no stale data can leak across iterations.
    @pl.when(pl.program_id(0) == 0)
    def _():
        xpad[:, :1, :] = jnp.zeros((G, 1, WCi), xpad.dtype)
        xpad[:, H + 1:, :] = jnp.zeros((G, 1, WCi), xpad.dtype)
        mpad[:, :1, :] = jnp.zeros((G, 1, WCo), mpad.dtype)
        mpad[:, H + 1:, :] = jnp.zeros((G, 1, WCo), mpad.dtype)

    # ---- conv1 + LeakyReLU ----
    xpad[:, 1:H + 1, :] = x_ref[...]
    mid = _leaky_relu(_band_conv(xpad, w1_ref, H))          # (G*H, W*Cout) f32

    # ---- conv2 + LeakyReLU ----
    mpad[:, 1:H + 1, :] = mid.reshape(G, H, WCo).astype(mpad.dtype)
    out = _leaky_relu(_band_conv(mpad, w2_ref, H))          # (G*H, W*Cout) f32

    y_ref[...] = out.reshape(G, H, WCo).astype(y_ref.dtype)


def _band_weights(w_hwio, W, dtype):
    """(3, 3, Ci, Co) HWIO conv taps -> (3, W*Ci, W*Co) block-tridiagonal.

    band[kh, ws*Ci+ci, w*Co+co] = w_hwio[kh, kw, ci, co] where ws = w + kw - 1
    (out-of-range source columns have no block => implicit zero W-padding).
    """
    _, _, Ci, Co = w_hwio.shape
    sel = jnp.stack([jnp.eye(W, k=1 - kw, dtype=jnp.float32) for kw in range(3)])
    band = jnp.einsum('hkio,ksw->hsiwo', w_hwio.astype(jnp.float32), sel)
    return band.reshape(3, W * Ci, W * Co).astype(dtype)


def spaconv_pallas(x, w1_hwio, w2_hwio, *, compute_dtype=jnp.float32, group=None):
    """x: (b, u, v, c, h, w);  w1: (3,3,Cin,Cout);  w2: (3,3,Cout,Cout)."""
    b, u, v, c, h, w = x.shape
    n = b * u * v
    cin, cout = c, w1_hwio.shape[-1]
    out_dtype = x.dtype

    # (b,u,v,c,h,w) -> (N, H, W*Cin) lane-flattened slabs.  Single HBM pass;
    # the optional bf16 cast fuses into it and halves the kernel's input DMA.
    # TODO(synk): if downstream consumers accept channels-last layouts, this
    # transpose and the output one below can be dropped entirely.
    xs = (x.reshape(n, c, h, w).transpose(0, 2, 3, 1)
           .reshape(n, h, w * cin).astype(compute_dtype))

    bw1 = _band_weights(w1_hwio, w, compute_dtype)   # (3, W*Cin,  W*Cout)
    bw2 = _band_weights(w2_hwio, w, compute_dtype)   # (3, W*Cout, W*Cout)

    # Images per grid step: amortize per-step overhead, stay far below the
    # scoped-VMEM limit (sized against v7x's 64 MiB physical VMEM), and keep
    # at least 2 grid steps so both v7x TensorCores get work.
    if group is None:
        per_img = (h + 2) * w * (cin + 4 * cout) * 4        # rough f32 live bytes
        group = max(1, min(n, 64, (8 << 20) // max(per_img, 1)))
        if n >= 2:
            group = min(group, (n + 1) // 2)
    n_pad = -(-n // group) * group
    if n_pad != n:
        xs = jnp.pad(xs, ((0, n_pad - n), (0, 0), (0, 0)))

    y = pl.pallas_call(
        spaconv_kernel,
        out_shape=jax.ShapeDtypeStruct((n_pad, h, w * cout), out_dtype),
        grid_spec=pltpu.PrefetchScalarGridSpec(
            num_scalar_prefetch=0,
            grid=(n_pad // group,),
            in_specs=[
                pl.BlockSpec((group, h, w * cin), lambda i: (i, 0, 0)),
                # constant index_maps -> weights stay resident, no per-step DMA
                pl.BlockSpec((3, w * cin, w * cout), lambda i: (0, 0, 0)),
                pl.BlockSpec((3, w * cout, w * cout), lambda i: (0, 0, 0)),
            ],
            out_specs=pl.BlockSpec((group, h, w * cout), lambda i: (i, 0, 0)),
            scratch_shapes=[
                pltpu.VMEM((group, h + 2, w * cin), compute_dtype),
                pltpu.VMEM((group, h + 2, w * cout), compute_dtype),
            ],
        ),
        compiler_params=pltpu.CompilerParams(
            dimension_semantics=("parallel",),
            vmem_limit_bytes=32 * 1024 * 1024,
        ),
    )(xs, bw1, bw2)

    # (N, H, W*Cout) -> (b, u, v, Cout, H, W)  (matches the torch module output)
    y = y[:n].reshape(n, h, w, cout).transpose(0, 3, 1, 2)
    return y.reshape(b, u, v, cout, h, w)


def spaconv_reference(x, w1_hwio, w2_hwio):
    """Pure-JAX reference (matches torch Conv2d pad=1, no bias, LeakyReLU 0.1)."""
    b, u, v, c, h, w = x.shape
    xn = x.reshape(-1, c, h, w).transpose(0, 2, 3, 1)
    dn = ('NHWC', 'HWIO', 'NHWC')
    y1 = jax.lax.conv_general_dilated(xn, w1_hwio, (1, 1), 'SAME',
                                      dimension_numbers=dn)
    y1 = jnp.where(y1 > 0, y1, 0.1 * y1)
    y2 = jax.lax.conv_general_dilated(y1, w2_hwio, (1, 1), 'SAME',
                                      dimension_numbers=dn)
    y2 = jnp.where(y2 > 0, y2, 0.1 * y2)
    cout = w2_hwio.shape[-1]
    return y2.transpose(0, 3, 1, 2).reshape(b, u, v, cout, h, w)


if __name__ == "__main__":
    key = jax.random.PRNGKey(0)
    kx, kw1, kw2 = jax.random.split(key, 3)

    # small shapes consistent with the module's forward
    b, u, v, cin, h, w = 2, 2, 2, 4, 16, 16
    cout = 8

    x = jax.random.normal(kx, (b, u, v, cin, h, w), dtype=jnp.float32)
    # HWIO = (3,3,Cin,Cout) weights (torch layout (Cout,Cin,3,3) transposed)
    w1 = jax.random.normal(kw1, (3, 3, cin, cout), dtype=jnp.float32) * 0.2
    w2 = jax.random.normal(kw2, (3, 3, cout, cout), dtype=jnp.float32) * 0.2

    ref = jax.block_until_ready(spaconv_reference(x, w1, w2))

    # f32 path (default)
    out = jax.block_until_ready(spaconv_pallas(x, w1, w2))
    assert out.shape == (b, u, v, cout, h, w), out.shape
    err = float(jnp.max(jnp.abs(out - ref)))
    assert jnp.allclose(out, ref, atol=2e-3, rtol=2e-3), err

    # bf16 MXU-operand path (f32 accumulation) — perf config for v6e / v7x
    out_bf16 = jax.block_until_ready(
        spaconv_pallas(x, w1, w2, compute_dtype=jnp.bfloat16))
    err_bf16 = float(jnp.max(jnp.abs(out_bf16 - ref)))
    assert jnp.allclose(out_bf16, ref, atol=0.25, rtol=0.1), err_bf16

    print("KERNEL_OK")
</pallas_src>

<mosaic_0001>
module attributes {stable_mosaic.version = 11 : i64} {
  func.func @spaconv_kernel(%arg0: i32, %arg1: memref<4x16x64xf32, #tpu.memory_space<vmem>>, %arg2: memref<3x64x128xf32, #tpu.memory_space<vmem>>, %arg3: memref<3x128x128xf32, #tpu.memory_space<vmem>>, %arg4: memref<4x16x128xf32, #tpu.memory_space<vmem>>, %arg5: memref<4x18x64xf32, #tpu.memory_space<vmem>>, %arg6: memref<4x18x128xf32, #tpu.memory_space<vmem>>) attributes {dimension_semantics = [#tpu.dimension_semantics<parallel>], iteration_bounds = array<i64: 2>, scalar_prefetch = 0 : i64, scratch_operands = 2 : i64, tpu.core_type = #tpu.core_type<tc>, window_params = [{transform_indices = @transform_0, window_bounds = array<i64: 4, 16, 64>}, {pipeline_mode = #tpu.pipeline_mode<synchronous>, transform_indices = @transform_1, window_bounds = array<i64: 3, 64, 128>}, {pipeline_mode = #tpu.pipeline_mode<synchronous>, transform_indices = @transform_2, window_bounds = array<i64: 3, 128, 128>}, {transform_indices = @transform_3, window_bounds = array<i64: 4, 16, 128>}]} {
    %c0_i32 = arith.constant 0 : i32
    %0 = arith.cmpi eq, %arg0, %c0_i32 : i32
    %1 = arith.extui %0 : i1 to i32
    %c0_i32_0 = arith.constant 0 : i32
    %2 = arith.cmpi ne, %1, %c0_i32_0 : i32
    scf.if %2 {
      %cst_57 = arith.constant 0.000000e+00 : f32
      %57 = vector.broadcast %cst_57 : f32 to vector<4x1x64xf32>
      %c0_58 = arith.constant 0 : index
      %c0_59 = arith.constant 0 : index
      %c0_60 = arith.constant 0 : index
      %58 = vector.load %arg5[%c0_58, %c0_59, %c0_60] : memref<4x18x64xf32, #tpu.memory_space<vmem>>, vector<4x1x64xf32>
      tpu.vector_store %arg5[%c0_58, %c0_59, %c0_60], %57 {strides = array<i32>} : memref<4x18x64xf32, #tpu.memory_space<vmem>>, vector<4x1x64xf32>,
      %cst_61 = arith.constant 0.000000e+00 : f32
      %59 = vector.broadcast %cst_61 : f32 to vector<4x1x64xf32>
      %c0_62 = arith.constant 0 : index
      %c17 = arith.constant 17 : index
      %c0_63 = arith.constant 0 : index
      %60 = vector.load %arg5[%c0_62, %c17, %c0_63] : memref<4x18x64xf32, #tpu.memory_space<vmem>>, vector<4x1x64xf32>
      tpu.vector_store %arg5[%c0_62, %c17, %c0_63], %59 {strides = array<i32>} : memref<4x18x64xf32, #tpu.memory_space<vmem>>, vector<4x1x64xf32>,
      %cst_64 = arith.constant 0.000000e+00 : f32
      %61 = vector.broadcast %cst_64 : f32 to vector<4x1x128xf32>
      %c0_65 = arith.constant 0 : index
      %c0_66 = arith.constant 0 : index
      %c0_67 = arith.constant 0 : index
      %62 = vector.load %arg6[%c0_65, %c0_66, %c0_67] : memref<4x18x128xf32, #tpu.memory_space<vmem>>, vector<4x1x128xf32>
      tpu.vector_store %arg6[%c0_65, %c0_66, %c0_67], %61 {strides = array<i32>} : memref<4x18x128xf32, #tpu.memory_space<vmem>>, vector<4x1x128xf32>,
      %cst_68 = arith.constant 0.000000e+00 : f32
      %63 = vector.broadcast %cst_68 : f32 to vector<4x1x128xf32>
      %c0_69 = arith.constant 0 : index
      %c17_70 = arith.constant 17 : index
      %c0_71 = arith.constant 0 : index
      %64 = vector.load %arg6[%c0_69, %c17_70, %c0_71] : memref<4x18x128xf32, #tpu.memory_space<vmem>>, vector<4x1x128xf32>
      tpu.vector_store %arg6[%c0_69, %c17_70, %c0_71], %63 {strides = array<i32>} : memref<4x18x128xf32, #tpu.memory_space<vmem>>, vector<4x1x128xf32>,
    } else {
    }
    %c0 = arith.constant 0 : index
    %c0_1 = arith.constant 0 : index
    %c0_2 = arith.constant 0 : index
    %3 = vector.load %arg1[%c0, %c0_1, %c0_2] : memref<4x16x64xf32, #tpu.memory_space<vmem>>, vector<4x16x64xf32>
    %c0_3 = arith.constant 0 : index
    %c1 = arith.constant 1 : index
    %c0_4 = arith.constant 0 : index
    %4 = vector.load %arg5[%c0_3, %c1, %c0_4] : memref<4x18x64xf32, #tpu.memory_space<vmem>>, vector<4x16x64xf32>
    tpu.vector_store %arg5[%c0_3, %c1, %c0_4], %3 {strides = array<i32>} : memref<4x18x64xf32, #tpu.memory_space<vmem>>, vector<4x16x64xf32>,
    %cst = arith.constant 0.000000e+00 : f32
    %5 = vector.broadcast %cst : f32 to vector<64x128xf32>
    %c0_5 = arith.constant 0 : index
    %c0_6 = arith.constant 0 : index
    %c0_7 = arith.constant 0 : index
    %6 = vector.load %arg5[%c0_5, %c0_6, %c0_7] : memref<4x18x64xf32, #tpu.memory_space<vmem>>, vector<4x16x64xf32>
    %7 = vector.shape_cast %6 : vector<4x16x64xf32> to vector<64x64xf32>
    %c0_8 = arith.constant 0 : index
    %c0_9 = arith.constant 0 : index
    %c0_10 = arith.constant 0 : index
    %8 = vector.load %arg2[%c0_8, %c0_9, %c0_10] : memref<3x64x128xf32, #tpu.memory_space<vmem>>, vector<1x64x128xf32>
    %9 = vector.shape_cast %8 : vector<1x64x128xf32> to vector<64x128xf32>
    %cst_11 = arith.constant dense<0.000000e+00> : vector<64x128xf32>
    %10 = tpu.matmul %7, %9, %cst_11 {dimension_numbers = #tpu.dot_dimension_numbers<[1], [0], [0], [1], [0, 0, 1, 1], [], []>} : vector<64x64xf32>, vector<64x128xf32>, vector<64x128xf32> -> vector<64x128xf32>
    %11 = arith.addf %5, %10 : vector<64x128xf32>
    %c0_12 = arith.constant 0 : index
    %c1_13 = arith.constant 1 : index
    %c0_14 = arith.constant 0 : index
    %12 = vector.load %arg5[%c0_12, %c1_13, %c0_14] : memref<4x18x64xf32, #tpu.memory_space<vmem>>, vector<4x16x64xf32>
    %13 = vector.shape_cast %12 : vector<4x16x64xf32> to vector<64x64xf32>
    %c1_15 = arith.constant 1 : index
    %c0_16 = arith.constant 0 : index
    %c0_17 = arith.constant 0 : index
    %14 = vector.load %arg2[%c1_15, %c0_16, %c0_17] : memref<3x64x128xf32, #tpu.memory_space<vmem>>, vector<1x64x128xf32>
    %15 = vector.shape_cast %14 : vector<1x64x128xf32> to vector<64x128xf32>
    %cst_18 = arith.constant dense<0.000000e+00> : vector<64x128xf32>
    %16 = tpu.matmul %13, %15, %cst_18 {dimension_numbers = #tpu.dot_dimension_numbers<[1], [0], [0], [1], [0, 0, 1, 1], [], []>} : vector<64x64xf32>, vector<64x128xf32>, vector<64x128xf32> -> vector<64x128xf32>
    %17 = arith.addf %11, %16 : vector<64x128xf32>
    %c0_19 = arith.constant 0 : index
    %c2 = arith.constant 2 : index
    %c0_20 = arith.constant 0 : index
    %18 = vector.load %arg5[%c0_19, %c2, %c0_20] : memref<4x18x64xf32, #tpu.memory_space<vmem>>, vector<4x16x64xf32>
    %19 = vector.shape_cast %18 : vector<4x16x64xf32> to vector<64x64xf32>
    %c2_21 = arith.constant 2 : index
    %c0_22 = arith.constant 0 : index
    %c0_23 = arith.constant 0 : index
    %20 = vector.load %arg2[%c2_21, %c0_22, %c0_23] : memref<3x64x128xf32, #tpu.memory_space<vmem>>, vector<1x64x128xf32>
    %21 = vector.shape_cast %20 : vector<1x64x128xf32> to vector<64x128xf32>
    %cst_24 = arith.constant dense<0.000000e+00> : vector<64x128xf32>
    %22 = tpu.matmul %19, %21, %cst_24 {dimension_numbers = #tpu.dot_dimension_numbers<[1], [0], [0], [1], [0, 0, 1, 1], [], []>} : vector<64x64xf32>, vector<64x128xf32>, vector<64x128xf32> -> vector<64x128xf32>
    %23 = arith.addf %17, %22 : vector<64x128xf32>
    %cst_25 = arith.constant 0.000000e+00 : f32
    %24 = vector.broadcast %cst_25 : f32 to vector<64x128xf32>
    %25 = arith.cmpf ogt, %23, %24 : vector<64x128xf32>
    %cst_26 = arith.constant 1.000000e-01 : f32
    %26 = vector.broadcast %cst_26 : f32 to vector<64x128xf32>
    %27 = arith.mulf %26, %23 : vector<64x128xf32>
    %28 = arith.select %25, %23, %27 : vector<64x128xi1>, vector<64x128xf32>
    %29 = vector.shape_cast %28 : vector<64x128xf32> to vector<4x16x128xf32>
    %c0_27 = arith.constant 0 : index
    %c1_28 = arith.constant 1 : index
    %c0_29 = arith.constant 0 : index
    %30 = vector.load %arg6[%c0_27, %c1_28, %c0_29] : memref<4x18x128xf32, #tpu.memory_space<vmem>>, vector<4x16x128xf32>
    tpu.vector_store %arg6[%c0_27, %c1_28, %c0_29], %29 {strides = array<i32>} : memref<4x18x128xf32, #tpu.memory_space<vmem>>, vector<4x16x128xf32>,
    %cst_30 = arith.constant 0.000000e+00 : f32
    %31 = vector.broadcast %cst_30 : f32 to vector<64x128xf32>
    %c0_31 = arith.constant 0 : index
    %c0_32 = arith.constant 0 : index
    %c0_33 = arith.constant 0 : index
    %32 = vector.load %arg6[%c0_31, %c0_32, %c0_33] : memref<4x18x128xf32, #tpu.memory_space<vmem>>, vector<4x16x128xf32>
    %33 = vector.shape_cast %32 : vector<4x16x128xf32> to vector<64x128xf32>
    %c0_34 = arith.constant 0 : index
    %c0_35 = arith.constant 0 : index
    %c0_36 = arith.constant 0 : index
    %34 = vector.load %arg3[%c0_34, %c0_35, %c0_36] : memref<3x128x128xf32, #tpu.memory_space<vmem>>, vector<1x128x128xf32>
    %35 = vector.shape_cast %34 : vector<1x128x128xf32> to vector<128x128xf32>
    %cst_37 = arith.constant dense<0.000000e+00> : vector<64x128xf32>
    %36 = tpu.matmul %33, %35, %cst_37 {dimension_numbers = #tpu.dot_dimension_numbers<[1], [0], [0], [1], [0, 0, 1, 1], [], []>} : vector<64x128xf32>, vector<128x128xf32>, vector<64x128xf32> -> vector<64x128xf32>
    %37 = arith.addf %31, %36 : vector<64x128xf32>
    %c0_38 = arith.constant 0 : index
    %c1_39 = arith.constant 1 : index
    %c0_40 = arith.constant 0 : index
    %38 = vector.load %arg6[%c0_38, %c1_39, %c0_40] : memref<4x18x128xf32, #tpu.memory_space<vmem>>, vector<4x16x128xf32>
    %39 = vector.shape_cast %38 : vector<4x16x128xf32> to vector<64x128xf32>
    %c1_41 = arith.constant 1 : index
    %c0_42 = arith.constant 0 : index
    %c0_43 = arith.constant 0 : index
    %40 = vector.load %arg3[%c1_41, %c0_42, %c0_43] : memref<3x128x128xf32, #tpu.memory_space<vmem>>, vector<1x128x128xf32>
    %41 = vector.shape_cast %40 : vector<1x128x128xf32> to vector<128x128xf32>
    %cst_44 = arith.constant dense<0.000000e+00> : vector<64x128xf32>
    %42 = tpu.matmul %39, %41, %cst_44 {dimension_numbers = #tpu.dot_dimension_numbers<[1], [0], [0], [1], [0, 0, 1, 1], [], []>} : vector<64x128xf32>, vector<128x128xf32>, vector<64x128xf32> -> vector<64x128xf32>
    %43 = arith.addf %37, %42 : vector<64x128xf32>
    %c0_45 = arith.constant 0 : index
    %c2_46 = arith.constant 2 : index
    %c0_47 = arith.constant 0 : index
    %44 = vector.load %arg6[%c0_45, %c2_46, %c0_47] : memref<4x18x128xf32, #tpu.memory_space<vmem>>, vector<4x16x128xf32>
    %45 = vector.shape_cast %44 : vector<4x16x128xf32> to vector<64x128xf32>
    %c2_48 = arith.constant 2 : index
    %c0_49 = arith.constant 0 : index
    %c0_50 = arith.constant 0 : index
    %46 = vector.load %arg3[%c2_48, %c0_49, %c0_50] : memref<3x128x128xf32, #tpu.memory_space<vmem>>, vector<1x128x128xf32>
    %47 = vector.shape_cast %46 : vector<1x128x128xf32> to vector<128x128xf32>
    %cst_51 = arith.constant dense<0.000000e+00> : vector<64x128xf32>
    %48 = tpu.matmul %45, %47, %cst_51 {dimension_numbers = #tpu.dot_dimension_numbers<[1], [0], [0], [1], [0, 0, 1, 1], [], []>} : vector<64x128xf32>, vector<128x128xf32>, vector<64x128xf32> -> vector<64x128xf32>
    %49 = arith.addf %43, %48 : vector<64x128xf32>
    %cst_52 = arith.constant 0.000000e+00 : f32
    %50 = vector.broadcast %cst_52 : f32 to vector<64x128xf32>
    %51 = arith.cmpf ogt, %49, %50 : vector<64x128xf32>
    %cst_53 = arith.constant 1.000000e-01 : f32
    %52 = vector.broadcast %cst_53 : f32 to vector<64x128xf32>
    %53 = arith.mulf %52, %49 : vector<64x128xf32>
    %54 = arith.select %51, %49, %53 : vector<64x128xi1>, vector<64x128xf32>
    %55 = vector.shape_cast %54 : vector<64x128xf32> to vector<4x16x128xf32>
    %c0_54 = arith.constant 0 : index
    %c0_55 = arith.constant 0 : index
    %c0_56 = arith.constant 0 : index
    %56 = vector.load %arg4[%c0_54, %c0_55, %c0_56] : memref<4x16x128xf32, #tpu.memory_space<vmem>>, vector<4x16x128xf32>
    tpu.vector_store %arg4[%c0_54, %c0_55, %c0_56], %55 {strides = array<i32>} : memref<4x16x128xf32, #tpu.memory_space<vmem>>, vector<4x16x128xf32>,
    return
  }
  func.func @transform_0(%arg0: i32) -> (i32, i32, i32) {
    %c0_i32 = arith.constant 0 : i32
    %c0_i32_0 = arith.constant 0 : i32
    %c0_i32_1 = arith.constant 0 : i32
    return %arg0, %c0_i32, %c0_i32_0 : i32, i32, i32
  }
  func.func @transform_1(%arg0: i32) -> (i32, i32, i32) {
    %c0_i32 = arith.constant 0 : i32
    %c0_i32_0 = arith.constant 0 : i32
    %c0_i32_1 = arith.constant 0 : i32
    %c0_i32_2 = arith.constant 0 : i32
    return %c0_i32, %c0_i32_0, %c0_i32_1 : i32, i32, i32
  }
  func.func @transform_2(%arg0: i32) -> (i32, i32, i32) {
    %c0_i32 = arith.constant 0 : i32
    %c0_i32_0 = arith.constant 0 : i32
    %c0_i32_1 = arith.constant 0 : i32
    %c0_i32_2 = arith.constant 0 : i32
    return %c0_i32, %c0_i32_0, %c0_i32_1 : i32, i32, i32
  }
  func.func @transform_3(%arg0: i32) -> (i32, i32, i32) {
    %c0_i32 = arith.constant 0 : i32
    %c0_i32_0 = arith.constant 0 : i32
    %c0_i32_1 = arith.constant 0 : i32
    return %arg0, %c0_i32, %c0_i32_0 : i32, i32, i32
  }
}

</mosaic_0001>

<bundles_post_ra>
// kernel: tpu_custom_call.1
= control target key start
LH: loop header
LB: loop body
LE: loop exit
PB: predicated region body
PF: predicated region fallthrough
CT: control target
= control target key end

     0   :  { %8 = vsyncpa [#allocation5], 0  ;;  %s2165_s0 = inlined_call_operand.hbm [shape: f32[8,16,64], index: 0, kind: input, shape index: {}]   ;;  %s2166_s1 = inlined_call_operand.hbm [shape: f32[3,64,128], index: 1, kind: input, shape index: {}]   ;;  %s2167_s2 = inlined_call_operand.hbm [shape: f32[3,128,128], index: 2, kind: input, shape index: {}]   ;;  %s2168_s3 = inlined_call_operand.hbm [shape: f32[8,16,128], index: 3, kind: output, shape index: {}]  }
   0x1   :  { %10 = vsyncpa [#allocation5 + $0x1], 0 }
   0x2   :  { %11 = vsyncpa [#allocation8], 0 }
   0x3   :  { %12 = vsyncpa [#allocation6], 0 }
   0x4   :  { %14 = vsyncpa [#allocation6 + $0x1], 0  ;;  %s1908_s12 = smov 0   ;;  %s1910_s13 = smov 0  }
   0x5   :  { %s1912_s14 = smov 0   ;;  %s1914_s15 = smov 0  }
   0x6 LB: > { %s1929_s16 = sadd.s32 4294967295, %s1877_s15   ;;  %s1272_s17 = sadd.s32 4294967294, %s1877_s15   ;;  %s1877_s15 = sphi %s1914_s15, %s2190_s15   ;;  %s1873_s14 = sphi %s1912_s14, %s2189_s14   ;;  %s1869_s13 = sphi %s1910_s13, %s2188_s13   ;;  %s1865_s12 = sphi %s1908_s12, %s2187_s12  }
   0x7   : > { %p40_p0 = scmp.ne.s32.totalorder %s1869_s13, %s1865_s12  ;;  %p2169_p1 = scmp.eq.s32.totalorder %s1929_s16, 0 }
   0x8   : > { %p106_p2 = scmp.eq.s32.totalorder %s1929_s16, 1  ;;  %p112_p3 = scmp.eq.s32.totalorder %s1272_s17, 1 }
   0x9   : > { %p1938_p4 = por %p2169_p1, %p40_p0  ;;  %p1273_p5 = scmp.ge.s32.totalorder %s1877_s15, 1 }
   0xa   : > { %p1943_p6 = por %p112_p3, %p40_p0  ;;  %p119_p7 = scmp.lt.s32.totalorder %s1877_s15, 3 }
   0xb   : > { %s2173_s18 = scalar_select %p1938_p4, 1, 0 }
   0xc   : > { %s2174_s19 = scalar_select %p1943_p6, 1, 0 }
   0xd   : > { %p1949_p9 = pnand %p1273_p5, %p119_p7  ;;  %s1879_s21 = smov [#allocation7]  }
   0xe   : > { %s131_s22 = sshll.u32 %s1879_s21, 4  ;;  %s1880_s24 = smov [#allocation9]   ;;  %s132_s22 = int_to_ptr.vmem [resolvable:$true] %s131_s22 }
   0xf   : > { %s2175_s20 = scalar_select %p1949_p9, 1, 0 }
  0x10   : > { %p1669_p10 = pneg %p1949_p9  ;;  %s144_s25 = sshll.u32 %s1880_s24, 4  ;;  %s145_s25 = int_to_ptr.vmem [resolvable:$true] %s144_s25 }
  0x11   : > { %s1740_s26 = scalar_lea.vmem %s132_s22, 3072  ;;  %p1748_p7 = scmp.lt.s32.totalorder %s132_s22, %s132_s22 }
  0x12   : > { %p1958_p12 = pnand %p1669_p10, %p2169_p1  ;;  %p1741_p0 = scmp.ne.s32.totalorder %s132_s22, %s1740_s26 }
  0x13   : > { %p1749_p11 = scmp.lt.s32.totalorder %s1740_s26, %s1740_s26 }
  0x14   : > { %p1731_p13 = pneg %p1958_p12 }
  0x15   : > { %p1750_p8 = por %p1749_p11, %p1748_p7 }
  0x16   : > { %p1743_p3 = pnand %p1741_p0, %p1731_p13 }
  0x18   : > { %p1744_p5 = pneg %p1743_p3 }
  0x1a   : > { %p1751_p10 = pnand %p1750_p8, %p1744_p5 }
  0x1c   : > { %1754 = shalt.err (!%p1751_p10)
}
  0x1d   : > { %s1881_s27 = smov 128   ;;  %s1882_s28 = smov 8  }
  0x1e   : > { %1672 = dma.hbm_to_vmem [thread:$0]  (!%p1958_p12), %s2166_s1, 3072, %s132_s22, [#allocation8], %s1881_s27, %s1881_s27, %s1882_s28  }
  0x1f   : > { %s1766_s4 = scalar_lea.vmem %s145_s25, 6144  ;;  %p1774_p8 = scmp.lt.s32.totalorder %s145_s25, %s145_s25 }
  0x20   : > { %p1767_p0 = scmp.ne.s32.totalorder %s145_s25, %s1766_s4  ;;  %p1775_p5 = scmp.lt.s32.totalorder %s1766_s4, %s1766_s4 }
  0x22   : > { %p1769_p3 = pnand %p1767_p0, %p1731_p13  ;;  %p1776_p7 = por %p1775_p5, %p1774_p8 }
  0x24   : > { %p1770_p11 = pneg %p1769_p3 }
  0x26   : > { %p1777_p10 = pnand %p1776_p7, %p1770_p11 }
  0x28   : > { %1780 = shalt.err (!%p1777_p10)
}
  0x29   : > { %1675 = dma.hbm_to_vmem [thread:$0]  (!%p1958_p12), %s2167_s2, 6144, %s145_s25, [#allocation8], %s1881_s27, %s1881_s27, %s1882_s28  }
  0x2a   : > { %s1987_s7 = sadd.s32 1, %s1877_s15   ;;  %s27_s8 = sadd.s32 1, %s1873_s14 }
  0x2b   : > { %s24_s9 = ssub.s32 %s1877_s15, %s1987_s7  ;;  %p34_p13 = scmp.ne.s32.totalorder %s1873_s14, %s1869_s13 }
  0x2c   : > { %p25_p0 = scmp.eq.s32.totalorder %s24_s9, 0  ;;  %p35_p3 = scmp.eq.s32.totalorder %s1877_s15, 0 }
  0x2d   : > { %p1997_p11 = por %p106_p2, %p34_p13  ;;  %p1686_p8 = scmp.lt.s32.totalorder %s1877_s15, 2 }
  0x2e   : > { %s2003_s11 = scalar_select %p25_p0, %s1873_s14, %s27_s8  }
  0x2f   : > { %s2177_s10 = scalar_select %p1997_p11, 1, 0 }
  0x30   : > { %p36_p5 = por %p35_p3, %p34_p13  ;;  %s158_s17 = sand.u32 1, %s1873_s14  }
  0x31   : > { %s1277_s21 = sshll.u32 %s158_s17, 6  ;;  %s1318_s22 = sshll.u32 %s1877_s15, 10 }
  0x32   : > { %s2010_s25 = scalar_lea.hbm %s2165_s0, %s1318_s22  ;;  %s162_s26 = scalar_lea.vmem [#allocation4], %s1277_s21 }
  0x33   : > { %s170_s29 = sshll.u32 %s162_s26, 4  ;;  %p2014_p2 = pnand %p1686_p8, %p36_p5  ;;  %s2012_s29 = int_to_ptr.vmem [resolvable:$true] %s170_s29 }
  0x34   : > { %s2018_s4 = scalar_lea.sflag [#allocation5], %s158_s17  ;;  %s1781_s5 = scalar_lea.hbm %s2010_s25, 1024 }
  0x35   : > { %p1782_p12 = scmp.ne.s32.totalorder %s2010_s25, %s1781_s5  ;;  %p1783_p7 = pneg %p2014_p2 }
  0x36   : > { %s1786_s9 = scalar_lea.hbm %s2165_s0, 2048  ;;  %p1787_p0 = scmp.lt.s32.totalorder %s2010_s25, %s2165_s0 }
  0x37   : > { %p1784_p10 = pnand %p1783_p7, %p1782_p12  ;;  %p1788_p3 = scmp.lt.s32.totalorder %s1786_s9, %s1781_s5 }
  0x39   : > { %p1785_p13 = pneg %p1784_p10  ;;  %p1789_p8 = por %p1788_p3, %p1787_p0 }
  0x3b   : > { %p1790_p5 = pnand %p1789_p8, %p1785_p13 }
  0x3d   : > { %1793 = shalt.err (!%p1790_p5)
}
  0x3e   : > { %s1794_s17 = scalar_lea.vmem %s2012_s29, 1024  ;;  %s1883_s23 = smov [#allocation4]  }
  0x3f   : > { %p1795_p1 = scmp.ne.s32.totalorder %s2012_s29, %s1794_s17  ;;  %s1799_s24 = sshll.u32 %s1883_s23, 4  ;;  %s1800_s24 = int_to_ptr.vmem [resolvable:$false] %s1799_s24 }
  0x40   : > { %s1801_s26 = scalar_lea.vmem %s1800_s24, 2048  ;;  %p1802_p10 = scmp.lt.s32.totalorder %s2012_s29, %s1800_s24 }
  0x41   : > { %p1797_p6 = pnand %p1795_p1, %p1783_p7  ;;  %p1803_p11 = scmp.lt.s32.totalorder %s1801_s26, %s1794_s17 }
  0x43   : > { %p1798_p12 = pneg %p1797_p6  ;;  %p1804_p4 = por %p1803_p11, %p1802_p10 }
  0x45   : > { %p1805_p9 = pnand %p1804_p4, %p1798_p12 }
  0x47   : > { %1808 = shalt.err (!%p1805_p9)
}
  0x48   : > { %1679 = dma.hbm_to_vmem [thread:$0]  (!%p2014_p2), %s2010_s25, 1024, %s2012_s29, %s2018_s4, %s1881_s27, %s1881_s27, %s1882_s28  }
  0x49   : > { %p2179_p1 = scmp.ne.s32.totalorder %s2175_s20, 0 }
  0x4a   : > { %s2045_s5 = sand.u32 (!%p2179_p1), 1, %s1869_s13   ;;  %p2180_p4 = scmp.ne.s32.totalorder (!%p2179_p1), %s2173_s18, 0 }
  0x4b   : > { %182 = sbr.rel (%p2179_p1) target bundleno = 597 (0x255), region = 32  ;;  %s1282_s6 = sshll.u32 (!%p2179_p1), %s2045_s5, 6 }
  0x4c   : > { %s185_s8 = scalar_lea.sflag (!%p2179_p1), [#allocation5], %s2045_s5  ;;  %s2049_s9 = scalar_lea.vmem (!%p2179_p1), [#allocation4], %s1282_s6 }
  0x50   : > { %1852 = dma.done.wait (%p2180_p4), %s185_s8, 1024  }
  0x51   : > { %1854 = vsyncadd (%p2180_p4), %s185_s8, 4294966272  ;;  %p2181_p6 = scmp.eq.s32.totalorder %s1929_s16, 0 }
  0x53   : > { %1856 = dma.done.wait (%p2181_p6), [#allocation8], 9216   ;;  %p2182_p9 = pmov %p2181_p6 }
  0x54   : > { %s2059_s20 = scalar_lea.vmem [#allocation10], %s1282_s6  ;;  %p2183_p11 = scmp.ne.s32.totalorder %s1929_s16, 0 }
  0x55   : > { %1858 = vsyncadd (%p2182_p9), [#allocation8], 4294958080 }
  0x56   : > { %224 = sbr.rel (%p2183_p11) target bundleno = 100 (0x64), region = 48 }
  0x5b   : > { %vm225_vm0 = vcmask 516096   ;;  %v1884_v0 = vmov 0.0  }
  0x5c   : > { %226 = vst.msk [vmem:[#allocation2] sm:$0x1] %vm225_vm0, %v1884_v0  ;;  %227 = vst.msk [vmem:[#allocation2 + $0x18] sm:$0x1] %vm225_vm0, %v1884_v0 }
  0x5d   : > { %228 = vst.msk [vmem:[#allocation2 + $0x30] sm:$0x1] %vm225_vm0, %v1884_v0  ;;  %229 = vst.msk [vmem:[#allocation2 + $0x48] sm:$0x1] %vm225_vm0, %v1884_v0 }
  0x5e   : > { %230 = vst.msk [vmem:[#allocation2 + $0x11] sm:$0x1] %vm225_vm0, %v1884_v0  ;;  %231 = vst.msk [vmem:[#allocation2 + $0x29] sm:$0x1] %vm225_vm0, %v1884_v0 }
  0x5f   : > { %232 = vst.msk [vmem:[#allocation2 + $0x41] sm:$0x1] %vm225_vm0, %v1884_v0  ;;  %233 = vst.msk [vmem:[#allocation2 + $0x59] sm:$0x1] %vm225_vm0, %v1884_v0 }
  0x60   : > { %234 = vst [vmem:[#allocation3] sm:$0x1] %v1884_v0  ;;  %235 = vst [vmem:[#allocation3 + $0x18] sm:$0x1] %v1884_v0 }
  0x61   : > { %236 = vst [vmem:[#allocation3 + $0x30] sm:$0x1] %v1884_v0  ;;  %237 = vst [vmem:[#allocation3 + $0x48] sm:$0x1] %v1884_v0 }
  0x62   : > { %238 = vst [vmem:[#allocation3 + $0x11] sm:$0x1] %v1884_v0  ;;  %239 = vst [vmem:[#allocation3 + $0x29] sm:$0x1] %v1884_v0 }
  0x63   : > { %240 = vst [vmem:[#allocation3 + $0x41] sm:$0x1] %v1884_v0  ;;  %241 = vst [vmem:[#allocation3 + $0x59] sm:$0x1] %v1884_v0 }
  0x64 PF: > { %v291_v1 = vld [vmem:[#allocation7 + $0x78] sm:$0xff]  ;;  %v290_v3 = vld [vmem:[#allocation7 + $0x70] sm:$0xff]  ;;  %v289_v5 = vld [vmem:[#allocation7 + $0x68] sm:$0xff]  ;;  %vm250_vm1 = vcmask 523264   ;;  %s1320_s18 = sshll.u32 %s1929_s16, 10  ;;  %s1180_s27 = sshll.u32 %s2059_s20, 4  ;;  %s2120_s27 = int_to_ptr.vmem [resolvable:$true] %s1180_s27 }
  0x65   : > { %v274_v2 = vld [vmem:[#allocation7 + $0x38] sm:$0xff]  ;;  %1441 = vmatprep.subr.mxu0 %v291_v1  ;;  %v273_v4 = vld [vmem:[#allocation7 + $0x30] sm:$0xff]  ;;  %v272_v6 = vld [vmem:[#allocation7 + $0x28] sm:$0xff]  ;;  %s2118_s29 = scalar_lea.hbm %s2168_s3, %s1320_s18  ;;  %s1166_s16 = scalar_lea.sflag [#allocation6], %s2045_s5 }
  0x66   : > { %1469 = vmatprep.subr.mxu1 %v274_v2  ;;  %1442 = vmatpush3.msra.mxu0 %v291_v1  ;;  %v288_v7 = vld [vmem:[#allocation7 + $0x60] sm:$0xff]  ;;  %v243_v10 = vld [vmem:[%s2049_s9 + $0x8] sm:$0xff]  ;;  %v287_v11 = vld [vmem:[#allocation7 + $0x58] sm:$0xff]  ;;  %s1809_s30 = scalar_lea.vmem %s2120_s27, 1024  ;;  %p2184_p7 = scmp.ne.s32.totalorder %s2177_s10, 0 }
  0x67   : > { %1470 = vmatpush3.msra.mxu1 %v274_v2  ;;  %1443 = vmatprep.subr.mxu0 %v290_v3  ;;  %v271_v8 = vld [vmem:[#allocation7 + $0x20] sm:$0xff]  ;;  %v270_v12 = vld [vmem:[#allocation7 + $0x18] sm:$0xff]  ;;  %252 = vst.msk [vmem:[#allocation2 + $0x9] sm:$0xff] %vm250_vm1, %v243_v10  ;;  %v244_v13 = vld [vmem:[%s2049_s9 + $0x10] sm:$0xff]  ;;  %p1810_p2 = scmp.ne.s32.totalorder %s2120_s27, %s1809_s30  ;;  %s1885_s4 = smov [#allocation10]  }
  0x68   : > { %1471 = vmatprep.subr.mxu1 %v273_v4  ;;  %1444 = vmatpush3.msra.mxu0 %v290_v3  ;;  %v242_v9 = vld [vmem:[%s2049_s9] sm:$0xff]  ;;  %v286_v14 = vld [vmem:[#allocation7 + $0x50] sm:$0xff]  ;;  %253 = vst.msk [vmem:[#allocation2 + $0x19] sm:$0xff] %vm250_vm1, %v244_v13  ;;  %v245_v15 = vld [vmem:[%s2049_s9 + $0x18] sm:$0xff]  ;;  %s1813_s21 = sshll.u32 %s1885_s4, 4  ;;  %s1814_s21 = int_to_ptr.vmem [resolvable:$false] %s1813_s21 }
  0x69   : > { %1472 = vmatpush3.msra.mxu1 %v273_v4  ;;  %1445 = vmatprep.subr.mxu0 %v289_v5  ;;  %251 = vst.msk [vmem:[#allocation2 + $0x1] sm:$0xff] %vm250_vm1, %v242_v9  ;;  %v269_v16 = vld [vmem:[#allocation7 + $0x10] sm:$0xff]  ;;  %254 = vst.msk [vmem:[#allocation2 + $0x21] sm:$0xff] %vm250_vm1, %v245_v15  ;;  %v246_v17 = vld [vmem:[%s2049_s9 + $0x20] sm:$0xff]  ;;  %p1811_p13 = pnand %p1810_p2, %p2184_p7  ;;  %s1815_s22 = scalar_lea.vmem %s1814_s21, 2048 }
  0x6a   : > { %1473 = vmatprep.subr.mxu1 %v272_v6  ;;  %1446 = vmatpush3.msra.mxu0 %v289_v5  ;;  %v247_v18 = vld [vmem:[%s2049_s9 + $0x28] sm:$0xff]  ;;  %255 = vst.msk [vmem:[#allocation2 + $0x31] sm:$0xff] %vm250_vm1, %v246_v17  ;;  %v248_v19 = vld [vmem:[%s2049_s9 + $0x30] sm:$0xff]  ;;  %v249_v20 = vld [vmem:[%s2049_s9 + $0x38] sm:$0xff]  ;;  %p1816_p3 = scmp.lt.s32.totalorder %s2120_s27, %s1814_s21  ;;  %p1817_p8 = scmp.lt.s32.totalorder %s1815_s22, %s1809_s30 }
  0x6b   : > { %1474 = vmatpush3.msra.mxu1 %v272_v6  ;;  %1447 = vmatprep.subr.mxu0 %v288_v7  ;;  %256 = vst.msk [vmem:[#allocation2 + $0x39] sm:$0xff] %vm250_vm1, %v247_v18  ;;  %v285_v21 = vld [vmem:[#allocation7 + $0x48] sm:$0xff]  ;;  %257 = vst.msk [vmem:[#allocation2 + $0x49] sm:$0xff] %vm250_vm1, %v248_v19  ;;  %v284_v23 = vld [vmem:[#allocation7 + $0x40] sm:$0xff]  ;;  %p1812_p0 = pneg %p1811_p13 }
  0x6c   : > { %1475 = vmatprep.subr.mxu1 %v271_v8  ;;  %1448 = vmatpush3.msra.mxu0 %v288_v7  ;;  %v268_v22 = vld [vmem:[#allocation7 + $0x8] sm:$0xff]  ;;  %258 = vst.msk [vmem:[#allocation2 + $0x51] sm:$0xff] %vm250_vm1, %v249_v20  ;;  %v267_v24 = vld [vmem:[#allocation7] sm:$0xff]  ;;  %v566_v29 = vld [vmem:[#allocation7 + $0xb8] sm:$0xff]  ;;  %p1818_p5 = por %p1817_p8, %p1816_p3 }
  0x6d   : > { %1476 = vmatpush3.msra.mxu1 %v271_v8  ;;  %1449 = vmatprep.subr.mxu0 %v287_v11  ;;  %v565_v32 = vld [vmem:[#allocation7 + $0xb0] sm:$0xff]  ;;  %v564_v35 = vld [vmem:[#allocation7 + $0xa8] sm:$0xff]  ;;  %v563_v37 = vld [vmem:[#allocation7 + $0xa0] sm:$0xff] }
  0x6e   : > { %1477 = vmatprep.subr.mxu1 %v270_v12  ;;  %1450 = vmatpush3.msra.mxu0 %v287_v11  ;;  %v276_v27 = vld [vmem:[#allocation2 + $0x9] sm:$0xff]  ;;  %v562_v41 = vld [vmem:[#allocation7 + $0x98] sm:$0xff]  ;;  %v559_v49 = vld [vmem:[#allocation7 + $0x80] sm:$0xff]  ;;  %p1819_p12 = pnand %p1818_p5, %p1812_p0 }
  0x6f   : > { %1478 = vmatpush3.msra.mxu1 %v270_v12  ;;  %1451 = vmatprep.subr.mxu0 %v286_v14  ;;  %v277_v30 = vld [vmem:[#allocation2 + $0x19] sm:$0xff]  ;;  %v561_v43 = vld [vmem:[#allocation7 + $0x90] sm:$0xff]  ;;  %v560_v47 = vld [vmem:[#allocation7 + $0x88] sm:$0xff] }
  0x70   : > { %1479 = vmatprep.subr.mxu1 %v269_v16  ;;  %1452 = vmatpush3.msra.mxu0 %v286_v14  ;;  %v275_v25 = vld [vmem:[#allocation2 + $0x1] sm:$0xff]  ;;  %v261_v31 = vld [vmem:[#allocation2 + $0x18] sm:$0xff]  ;;  %v551_v50 = vld [vmem:[#allocation2 + $0xa] sm:$0xff] }
  0x71   : > { %1480 = vmatpush3.msra.mxu1 %v269_v16  ;;  %1453 = vmatprep.subr.mxu0 %v285_v21  ;;  %v259_v26 = vld [vmem:[#allocation2] sm:$0xff]  ;;  %v260_v28 = vld [vmem:[#allocation2 + $0x8] sm:$0xff]  ;;  %v279_v36 = vld [vmem:[#allocation2 + $0x31] sm:$0xff] }
  0x72   : > { %1481 = vmatprep.subr.mxu1 %v268_v22  ;;  %1454 = vmatpush3.msra.mxu0 %v285_v21  ;;  %v262_v33 = vld [vmem:[#allocation2 + $0x20] sm:$0xff]  ;;  %v263_v38 = vld [vmem:[#allocation2 + $0x30] sm:$0xff]  ;;  %v264_v39 = vld [vmem:[#allocation2 + $0x38] sm:$0xff] }
  0x73   : > { %1482 = vmatpush3.msra.mxu1 %v268_v22  ;;  %1455 = vmatprep.subr.mxu0 %v284_v23  ;;  %v278_v34 = vld [vmem:[#allocation2 + $0x21] sm:$0xff]  ;;  %v280_v40 = vld [vmem:[#allocation2 + $0x39] sm:$0xff]  ;;  %v281_v42 = vld [vmem:[#allocation2 + $0x49] sm:$0xff] }
  0x74   : > { %1483 = vmatprep.subr.mxu1 %v267_v24  ;;  %1456 = vmatpush3.msra.mxu0 %v284_v23  ;;  %v265_v44 = vld [vmem:[#allocation2 + $0x48] sm:$0xff]  ;;  %v266_v45 = vld [vmem:[#allocation2 + $0x50] sm:$0xff]  ;;  %v552_v51 = vld [vmem:[#allocation2 + $0x1a] sm:$0xff] }
  0x75   : > { %1457 = vmatprep.mubr.msk.f32.mxu0 %vm250_vm1, %v275_v25  ;;  %1484 = vmatpush3.msra.mxu1 %v267_v24  ;;  %v282_v46 = vld [vmem:[#allocation2 + $0x51] sm:$0xff]  ;;  %v550_v48 = vld [vmem:[#allocation2 + $0x2] sm:$0xff]  ;;  %v555_v54 = vld [vmem:[#allocation2 + $0x3a] sm:$0xff] }
  0x76   : > { %1485 = vmatprep.mubr.msk.f32.mxu1 %vm250_vm1, %v259_v26  ;;  %1458 = vmatmul.mubr.msk.f32.vlgmr.msra.gmra.mxu0 %vm250_vm1, %v276_v27  ;;  %v553_v52 = vld [vmem:[#allocation2 + $0x22] sm:$0xff]  ;;  %v554_v53 = vld [vmem:[#allocation2 + $0x32] sm:$0xff]  ;;  %v556_v55 = vld [vmem:[#allocation2 + $0x4a] sm:$0xff] }
  0x77   : > { %1486 = vmatmul.mubr.msk.f32.vlgmr.msra.gmra.mxu1 %vm250_vm1, %v260_v28  ;;  %1497 = vmatprep.subr.mxu0 %v566_v29  ;;  %v557_v56 = vld [vmem:[#allocation2 + $0x52] sm:$0xff]  ;;  %v782_v59 = vld [vmem:[#allocation9 + $0xe8] sm:$0xff]  ;;  %v781_v60 = vld [vmem:[#allocation9 + $0xe0] sm:$0xff] }
  0x78   : > { %1460 = vmatprep.mubr.msk.f32.mxu0 %vm250_vm1, %v277_v30  ;;  %1498 = vmatpush3.msra.mxu0 %v566_v29  ;;  %v784_v57 = vld [vmem:[#allocation9 + $0xf8] sm:$0xff]  ;;  %v783_v58 = vld [vmem:[#allocation9 + $0xf0] sm:$0xff]  ;;  %v778_v1 = vld [vmem:[#allocation9 + $0xc8] sm:$0xff] }
  0x79   : > { %1488 = vmatprep.mubr.msk.f32.mxu1 %vm250_vm1, %v261_v31  ;;  %1499 = vmatprep.subr.mxu0 %v565_v32  ;;  %v780_v61 = vld [vmem:[#allocation9 + $0xd8] sm:$0xff]  ;;  %v779_v63 = vld [vmem:[#allocation9 + $0xd0] sm:$0xff]  ;;  %v757_v2 = vld [vmem:[#allocation9 + $0x68] sm:$0xff] }
  0x7a   : > { %1500 = vmatpush3.msra.mxu0 %v565_v32  ;;  %1525 = vmatprep.subr.mxu1 %v784_v57  ;;  %v759_v62 = vld [vmem:[#allocation9 + $0x78] sm:$0xff]  ;;  %v758_v0 = vld [vmem:[#allocation9 + $0x70] sm:$0xff]  ;;  %v777_v3 = vld [vmem:[#allocation9 + $0xc0] sm:$0xff] }
  0x7b   : > { %1489 = vmatmul.mubr.msk.f32.gmra.mxu1 %vm250_vm1, %v262_v33  ;;  %1461 = vmatmul.mubr.msk.f32.gmra.mxu0 %vm250_vm1, %v278_v34  ;;  %v756_v4 = vld [vmem:[#allocation9 + $0x60] sm:$0xff]  ;;  %v776_v5 = vld [vmem:[#allocation9 + $0xb8] sm:$0xff]  ;;  %v775_v7 = vld [vmem:[#allocation9 + $0xb0] sm:$0xff] }
  0x7c   : > { %1501 = vmatprep.subr.mxu0 %v564_v35  ;;  %1463 = vmatprep.mubr.msk.f32.mxu0 %vm250_vm1, %v279_v36  ;;  %v755_v6 = vld [vmem:[#allocation9 + $0x58] sm:$0xff]  ;;  %v754_v8 = vld [vmem:[#allocation9 + $0x50] sm:$0xff]  ;;  %v774_v9 = vld [vmem:[#allocation9 + $0xa8] sm:$0xff] }
  0x7d   : > { %1502 = vmatpush3.msra.mxu0 %v564_v35  ;;  %1491 = vmatprep.mubr.msk.f32.mxu1 %vm250_vm1, %v263_v38  ;;  %v753_v10 = vld [vmem:[#allocation9 + $0x48] sm:$0xff]  ;;  %v773_v11 = vld [vmem:[#allocation9 + $0xa0] sm:$0xff]  ;;  %v772_v13 = vld [vmem:[#allocation9 + $0x98] sm:$0xff] }
  0x7e   : > { %1503 = vmatprep.subr.mxu0 %v563_v37  ;;  %1526 = vmatpush3.msra.mxu1 %v784_v57  ;;  %v752_v12 = vld [vmem:[#allocation9 + $0x40] sm:$0xff]  ;;  %v751_v14 = vld [vmem:[#allocation9 + $0x38] sm:$0xff]  ;;  %v771_v15 = vld [vmem:[#allocation9 + $0x90] sm:$0xff] }
  0x7f   : > { %1504 = vmatpush3.msra.mxu0 %v563_v37  ;;  %1492 = vmatmul.mubr.msk.f32.gmra.mxu1 %vm250_vm1, %v264_v39  ;;  %v750_v16 = vld [vmem:[#allocation9 + $0x30] sm:$0xff]  ;;  %v770_v17 = vld [vmem:[#allocation9 + $0x88] sm:$0xff]  ;;  %v769_v19 = vld [vmem:[#allocation9 + $0x80] sm:$0xff] }
  0x80   : > { %1464 = vmatmul.mubr.msk.f32.gmra.mxu0 %vm250_vm1, %v280_v40  ;;  %1505 = vmatprep.subr.mxu0 %v562_v41  ;;  %v749_v18 = vld [vmem:[#allocation9 + $0x28] sm:$0xff]  ;;  %v748_v20 = vld [vmem:[#allocation9 + $0x20] sm:$0xff]  ;;  %v2103_v21 = vld [vmem:[#allocation9 + $0x178] sm:$0xff] }
  0x81   : > { %1506 = vmatpush3.msra.mxu0 %v562_v41  ;;  %1466 = vmatprep.mubr.msk.f32.mxu0 %vm250_vm1, %v281_v42  ;;  %v747_v22 = vld [vmem:[#allocation9 + $0x18] sm:$0xff]  ;;  %v746_v23 = vld [vmem:[#allocation9 + $0x10] sm:$0xff]  ;;  %v745_v24 = vld [vmem:[#allocation9 + $0x8] sm:$0xff] }
  0x82   : > { %1507 = vmatprep.subr.mxu0 %v561_v43  ;;  %1494 = vmatprep.mubr.msk.f32.mxu1 %vm250_vm1, %v265_v44  ;;  %v744_v25 = vld [vmem:[#allocation9] sm:$0xff] }
  0x83   : > { %1508 = vmatpush3.msra.mxu0 %v561_v43  ;;  %1495 = vmatmul.mubr.msk.f32.gmra.mxu1 %vm250_vm1, %v266_v45 }
  0x84   : > { %1467 = vmatmul.mubr.msk.f32.gmra.mxu0 %vm250_vm1, %v282_v46  ;;  %1509 = vmatprep.subr.mxu0 %v560_v47 }
  0x85   : > { %1510 = vmatpush3.msra.mxu0 %v560_v47  ;;  %1513 = vmatprep.mubr.msk.f32.mxu0 %vm250_vm1, %v550_v48 }
  0x86   : > { %1511 = vmatprep.subr.mxu0 %v559_v49  ;;  %1527 = vmatprep.subr.mxu1 %v783_v58 }
  0x87   : > { %1512 = vmatpush3.msra.mxu0 %v559_v49  ;;  %1528 = vmatpush3.msra.mxu1 %v783_v58 }
  0x88   : > { %1514 = vmatmul.mubr.msk.f32.vlgmr.msra.gmra.mxu0 %vm250_vm1, %v551_v50  ;;  %1529 = vmatprep.subr.mxu1 %v782_v59 }
  0x89   : > { %1516 = vmatprep.mubr.msk.f32.mxu0 %vm250_vm1, %v552_v51  ;;  %1530 = vmatpush3.msra.mxu1 %v782_v59 }
  0x8a   : > { %1531 = vmatprep.subr.mxu1 %v781_v60  ;;  %1569 = vmatprep.subr.mxu0 %v759_v62 }
  0x8b   : > { %1532 = vmatpush3.msra.mxu1 %v781_v60  ;;  %1570 = vmatpush3.msra.mxu0 %v759_v62 }
  0x8c   : > { %1517 = vmatmul.mubr.msk.f32.gmra.mxu0 %vm250_vm1, %v553_v52  ;;  %1533 = vmatprep.subr.mxu1 %v780_v61 }
  0x8d   : > { %1519 = vmatprep.mubr.msk.f32.mxu0 %vm250_vm1, %v554_v53  ;;  %1534 = vmatpush3.msra.mxu1 %v780_v61  ;;  %v1018_v61 = vld [vmem:[#allocation9 + $0x170] sm:$0xff] }
  0x8e   : > { %1535 = vmatprep.subr.mxu1 %v779_v63  ;;  %1571 = vmatprep.subr.mxu0 %v758_v0 }
  0x8f   : > { %1536 = vmatpush3.msra.mxu1 %v779_v63  ;;  %1572 = vmatpush3.msra.mxu0 %v758_v0 }
  0x90   : > { %1520 = vmatmul.mubr.msk.f32.gmra.mxu0 %vm250_vm1, %v555_v54  ;;  %1537 = vmatprep.subr.mxu1 %v778_v1 }
  0x91   : > { %1522 = vmatprep.mubr.msk.f32.mxu0 %vm250_vm1, %v556_v55  ;;  %1573 = vmatprep.subr.mxu0 %v757_v2 }
  0x92   : > { %1538 = vmatpush3.msra.mxu1 %v778_v1  ;;  %1574 = vmatpush3.msra.mxu0 %v757_v2 }
  0x93   : > { %1539 = vmatprep.subr.mxu1 %v777_v3  ;;  %1575 = vmatprep.subr.mxu0 %v756_v4 }
  0x94   : > { %1523 = vmatmul.mubr.msk.f32.gmra.mxu0 %vm250_vm1, %v557_v56  ;;  %1540 = vmatpush3.msra.mxu1 %v777_v3 }
  0x95   : > { %1576 = vmatpush3.msra.mxu0 %v756_v4  ;;  %1541 = vmatprep.subr.mxu1 %v776_v5  ;;  %v1017_v4 = vld [vmem:[#allocation9 + $0x168] sm:$0xff] }
  0x96   : > { %1577 = vmatprep.subr.mxu0 %v755_v6  ;;  %1542 = vmatpush3.msra.mxu1 %v776_v5 }
  0x97   : > { %1578 = vmatpush3.msra.mxu0 %v755_v6  ;;  %1543 = vmatprep.subr.mxu1 %v775_v7 }
  0x98   : > { %1579 = vmatprep.subr.mxu0 %v754_v8  ;;  %1544 = vmatpush3.msra.mxu1 %v775_v7 }
  0x99   : > { %1580 = vmatpush3.msra.mxu0 %v754_v8  ;;  %1545 = vmatprep.subr.mxu1 %v774_v9 }
  0x9a   : > { %1581 = vmatprep.subr.mxu0 %v753_v10  ;;  %1546 = vmatpush3.msra.mxu1 %v774_v9 }
  0x9b   : > { %1582 = vmatpush3.msra.mxu0 %v753_v10  ;;  %1547 = vmatprep.subr.mxu1 %v773_v11  ;;  %v1016_v10 = vld [vmem:[#allocation9 + $0x160] sm:$0xff] }
  0x9c   : > { %1583 = vmatprep.subr.mxu0 %v752_v12  ;;  %1548 = vmatpush3.msra.mxu1 %v773_v11 }
  0x9d   : > { %1584 = vmatpush3.msra.mxu0 %v752_v12  ;;  %1549 = vmatprep.subr.mxu1 %v772_v13 }
  0x9e   : > { %1585 = vmatprep.subr.mxu0 %v751_v14  ;;  %1550 = vmatpush3.msra.mxu1 %v772_v13 }
  0x9f   : > { %1586 = vmatpush3.msra.mxu0 %v751_v14  ;;  %1551 = vmatprep.subr.mxu1 %v771_v15 }
  0xa0   : > { %1587 = vmatprep.subr.mxu0 %v750_v16  ;;  %1552 = vmatpush3.msra.mxu1 %v771_v15 }
  0xa1   : > { %1588 = vmatpush3.msra.mxu0 %v750_v16  ;;  %1553 = vmatprep.subr.mxu1 %v770_v17 }
  0xa2   : > { %1589 = vmatprep.subr.mxu0 %v749_v18  ;;  %1554 = vmatpush3.msra.mxu1 %v770_v17 }
  0xa3   : > { %1590 = vmatpush3.msra.mxu0 %v749_v18  ;;  %1555 = vmatprep.subr.mxu1 %v769_v19 }
  0xa4   : > { %1591 = vmatprep.subr.mxu0 %v748_v20  ;;  %1556 = vmatpush3.msra.mxu1 %v769_v19 }
  0xa5   : > { %1592 = vmatpush3.msra.mxu0 %v748_v20  ;;  %1613 = vmatprep.subr.mxu1 %v2103_v21  ;;  %v1015_v20 = vld [vmem:[#allocation9 + $0x158] sm:$0xff] }
  0xa6   : > { %1593 = vmatprep.subr.mxu0 %v747_v22 }
  0xa7   : > { %1594 = vmatpush3.msra.mxu0 %v747_v22 }
  0xa8   : > { %1595 = vmatprep.subr.mxu0 %v746_v23 }
  0xa9   : > { %1596 = vmatpush3.msra.mxu0 %v746_v23  ;;  %v1014_v23 = vld [vmem:[#allocation9 + $0x150] sm:$0xff] }
  0xaa   : > { %1597 = vmatprep.subr.mxu0 %v745_v24 }
  0xab   : > { %1598 = vmatpush3.msra.mxu0 %v745_v24 }
  0xac   : > { %1599 = vmatprep.subr.mxu0 %v744_v25 }
  0xad   : > { %1600 = vmatpush3.msra.mxu0 %v744_v25 }
 0x136   : > { %v1459_v26 = vpop.f32.mrf.mxu0 }
 0x137   : > { %v1487_v27 = vpop.f32.mrf.mxu1 }
 0x138   : > { %v382_v28 = vpop.f32.mrf.mxu0  ;;  %v517_v39 = vadd.f32 %v1487_v27, %v1459_v26  ;;  %v1013_v27 = vld [vmem:[#allocation9 + $0x148] sm:$0xff] }
 0x139   : > { %v511_v29 = vpop.f32.mrf.mxu1 }
 0x13a   : > { %v512_v41 = vadd.f32 %v511_v29, %v382_v28  ;;  %v1012_v28 = vld [vmem:[#allocation9 + $0x140] sm:$0xff] }
 0x13b   : > { %v1462_v30 = vpop.f32.mrf.mxu0  ;;  %v1490_v31 = vpop.f32.mrf.mxu1 }
 0x13c   : > { %v527_v45 = vadd.f32 %v1490_v31, %v1462_v30  ;;  %v1011_v31 = vld [vmem:[#allocation9 + $0x138] sm:$0xff] }
 0x13d   : > { %v392_v32 = vpop.f32.mrf.mxu0  ;;  %v521_v34 = vpop.f32.mrf.mxu1 }
 0x13e   : > { %v522_v48 = vadd.f32 %v521_v34, %v392_v32 }
 0x13f   : > { %v1493_v37 = vpop.f32.mrf.mxu1 }
 0x140   : > { %v1465_v33 = vpop.f32.mrf.mxu0 }
 0x141   : > { %v531_v42 = vpop.f32.mrf.mxu1  ;;  %v537_v54 = vadd.f32 %v1493_v37, %v1465_v33  ;;  %v1010_v33 = vld [vmem:[#allocation9 + $0x130] sm:$0xff]  ;;  %v1008_v37 = vld [vmem:[#allocation9 + $0x120] sm:$0xff] }
 0x142   : > { %v402_v35 = vpop.f32.mrf.mxu0 }
 0x143   : > { %v1496_v50 = vpop.f32.mrf.mxu1  ;;  %v532_v59 = vadd.f32 %v531_v42, %v402_v35 }
 0x144   : > { %v1468_v36 = vpop.f32.mrf.mxu0 }
 0x145   : > { %v541_v62 = vpop.f32.mrf.mxu1  ;;  %v547_v2 = vadd.f32 %v1496_v50, %v1468_v36  ;;  %v1009_v36 = vld [vmem:[#allocation9 + $0x128] sm:$0xff] }
 0x146   : > { %v412_v38 = vpop.f32.mrf.mxu0 }
 0x147   : > { %v542_v8 = vadd.f32 %v541_v62, %v412_v38  ;;  %v1007_v38 = vld [vmem:[#allocation9 + $0x118] sm:$0xff] }
 0x148   : > { %v1515_v40 = vpop.f32.mrf.mxu0 }
 0x149   : > { %v697_v43 = vadd.f32 %v1515_v40, %v517_v39  ;;  %v1006_v39 = vld [vmem:[#allocation9 + $0x110] sm:$0xff]  ;;  %v1005_v40 = vld [vmem:[#allocation9 + $0x108] sm:$0xff] }
 0x14a   : > { %v657_v44 = vpop.f32.mrf.mxu0 }
 0x14b   : > { %vm705_vm2 = vcmp.gt.f32.partialorder %v697_v43, 0.0  ;;  %v713_v46 = vmul.f32 0.1, %v697_v43  ;;  %v696_v47 = vadd.f32 %v657_v44, %v512_v41  ;;  %v1004_v41 = vld [vmem:[#allocation9 + $0x100] sm:$0xff] }
 0x14c   : > { %v1518_v49 = vpop.f32.mrf.mxu0 }
 0x14d   : > { %v721_v51 = vsel %vm705_vm2, %v697_v43, %v713_v46  ;;  %vm704_vm3 = vcmp.gt.f32.partialorder %v696_v47, 0.0  ;;  %v712_v52 = vmul.f32 0.1, %v696_v47  ;;  %v699_v53 = vadd.f32 %v1518_v49, %v527_v45 }
 0x14e   : > { %729 = vst [vmem:[#allocation3 + $0x9] sm:$0xff] %v721_v51  ;;  %v667_v55 = vpop.f32.mrf.mxu0 }
 0x14f   : > { %v720_v56 = vsel %vm704_vm3, %v696_v47, %v712_v52  ;;  %vm707_vm4 = vcmp.gt.f32.partialorder %v699_v53, 0.0  ;;  %v715_v57 = vmul.f32 0.1, %v699_v53  ;;  %v698_v58 = vadd.f32 %v667_v55, %v522_v48 }
 0x150   : > { %728 = vst [vmem:[#allocation3 + $0x1] sm:$0xff] %v720_v56  ;;  %v1521_v60 = vpop.f32.mrf.mxu0  ;;  %1557 = vmatprep.mubr.f32.mxu1 %v720_v56 }
 0x151   : > { %v723_v63 = vsel %vm707_vm4, %v699_v53, %v715_v57  ;;  %vm706_vm5 = vcmp.gt.f32.partialorder %v698_v58, 0.0  ;;  %v714_v0 = vmul.f32 0.1, %v698_v58  ;;  %v701_v1 = vadd.f32 %v1521_v60, %v537_v54  ;;  %1558 = vmatmul.mubr.f32.vlgmr.msra.gmra.mxu1 %v721_v51 }
 0x152   : > { %731 = vst [vmem:[#allocation3 + $0x21] sm:$0xff] %v723_v63  ;;  %v677_v3 = vpop.f32.mrf.mxu0  ;;  %1614 = vmatpush3.msra.mxu1 %v2103_v21 }
 0x153   : > { %v722_v5 = vsel %vm706_vm5, %v698_v58, %v714_v0  ;;  %vm709_vm6 = vcmp.gt.f32.partialorder %v701_v1, 0.0  ;;  %v717_v6 = vmul.f32 0.1, %v701_v1  ;;  %v700_v7 = vadd.f32 %v677_v3, %v532_v59  ;;  %1615 = vmatprep.subr.mxu1 %v1018_v61 }
 0x154   : > { %730 = vst [vmem:[#allocation3 + $0x19] sm:$0xff] %v722_v5  ;;  %v1524_v9 = vpop.f32.mrf.mxu0  ;;  %1616 = vmatpush3.msra.mxu1 %v1018_v61  ;;  %1560 = vmatprep.mubr.f32.mxu1 %v722_v5 }
 0x155   : > { %v725_v11 = vsel %vm709_vm6, %v701_v1, %v717_v6  ;;  %vm708_vm7 = vcmp.gt.f32.partialorder %v700_v7, 0.0  ;;  %v716_v12 = vmul.f32 0.1, %v700_v7  ;;  %v703_v13 = vadd.f32 %v1524_v9, %v547_v2  ;;  %1617 = vmatprep.subr.mxu1 %v1017_v4  ;;  %1561 = vmatmul.mubr.f32.gmra.mxu1 %v723_v63  ;;  %v996_v42 = vld [vmem:[#allocation3 + $0xa] sm:$0xff] }
 0x156   : > { %733 = vst [vmem:[#allocation3 + $0x39] sm:$0xff] %v725_v11  ;;  %v687_v14 = vpop.f32.mrf.mxu0  ;;  %1618 = vmatpush3.msra.mxu1 %v1017_v4 }
 0x157   : > { %v724_v15 = vsel %vm708_vm7, %v700_v7, %v716_v12  ;;  %vm711_vm8 = vcmp.gt.f32.partialorder %v703_v13, 0.0  ;;  %v719_v16 = vmul.f32 0.1, %v703_v13  ;;  %v702_v17 = vadd.f32 %v687_v14, %v542_v8  ;;  %v736_v18 = vld [vmem:[#allocation3] sm:$0xff]  ;;  %v737_v19 = vld [vmem:[#allocation3 + $0x8] sm:$0xff]  ;;  %1619 = vmatprep.subr.mxu1 %v1016_v10 }
 0x158   : > { %732 = vst [vmem:[#allocation3 + $0x31] sm:$0xff] %v724_v15  ;;  %1601 = vmatprep.mubr.f32.mxu0 %v736_v18  ;;  %1620 = vmatpush3.msra.mxu1 %v1016_v10  ;;  %v995_v32 = vld [vmem:[#allocation3 + $0x2] sm:$0xff] }
 0x159   : > { %v727_v21 = vsel %vm711_vm8, %v703_v13, %v719_v16  ;;  %vm710_vm9 = vcmp.gt.f32.partialorder %v702_v17, 0.0  ;;  %v718_v22 = vmul.f32 0.1, %v702_v17  ;;  %1602 = vmatmul.mubr.f32.vlgmr.msra.gmra.mxu0 %v737_v19  ;;  %1563 = vmatprep.mubr.f32.mxu1 %v724_v15  ;;  %v998_v44 = vld [vmem:[#allocation3 + $0x22] sm:$0xff] }
 0x15a   : > { %735 = vst [vmem:[#allocation3 + $0x51] sm:$0xff] %v727_v21  ;;  %1621 = vmatprep.subr.mxu1 %v1015_v20  ;;  %1564 = vmatmul.mubr.f32.gmra.mxu1 %v725_v11 }
 0x15b   : > { %v726_v24 = vsel %vm710_vm9, %v702_v17, %v718_v22  ;;  %v738_v25 = vld [vmem:[#allocation3 + $0x18] sm:$0xff]  ;;  %v739_v26 = vld [vmem:[#allocation3 + $0x20] sm:$0xff]  ;;  %1622 = vmatpush3.msra.mxu1 %v1015_v20 }
 0x15c   : > { %734 = vst [vmem:[#allocation3 + $0x49] sm:$0xff] %v726_v24  ;;  %1604 = vmatprep.mubr.f32.mxu0 %v738_v25  ;;  %1623 = vmatprep.subr.mxu1 %v1014_v23  ;;  %v997_v43 = vld [vmem:[#allocation3 + $0x1a] sm:$0xff] }
 0x15d   : > { %1605 = vmatmul.mubr.f32.gmra.mxu0 %v739_v26  ;;  %1624 = vmatpush3.msra.mxu1 %v1014_v23  ;;  %v1000_v46 = vld [vmem:[#allocation3 + $0x3a] sm:$0xff] }
 0x15e   : > { %1566 = vmatprep.mubr.f32.mxu1 %v726_v24  ;;  %1625 = vmatprep.subr.mxu1 %v1013_v27 }
 0x15f   : > { %v740_v29 = vld [vmem:[#allocation3 + $0x30] sm:$0xff]  ;;  %v741_v30 = vld [vmem:[#allocation3 + $0x38] sm:$0xff]  ;;  %1567 = vmatmul.mubr.f32.gmra.mxu1 %v727_v21 }
 0x160   : > { %1607 = vmatprep.mubr.f32.mxu0 %v740_v29  ;;  %1626 = vmatpush3.msra.mxu1 %v1013_v27  ;;  %v999_v45 = vld [vmem:[#allocation3 + $0x32] sm:$0xff] }
 0x161   : > { %1608 = vmatmul.mubr.f32.gmra.mxu0 %v741_v30  ;;  %1627 = vmatprep.subr.mxu1 %v1012_v28  ;;  %v1002_v48 = vld [vmem:[#allocation3 + $0x52] sm:$0xff] }
 0x162   : > { %1645 = vmatprep.mubr.f32.mxu1 %v995_v32  ;;  %1628 = vmatpush3.msra.mxu1 %v1012_v28 }
 0x163   : > { %v742_v34 = vld [vmem:[#allocation3 + $0x48] sm:$0xff]  ;;  %v743_v35 = vld [vmem:[#allocation3 + $0x50] sm:$0xff]  ;;  %1629 = vmatprep.subr.mxu1 %v1011_v31 }
 0x164   : > { %1610 = vmatprep.mubr.f32.mxu0 %v742_v34  ;;  %1630 = vmatpush3.msra.mxu1 %v1011_v31  ;;  %v1001_v47 = vld [vmem:[#allocation3 + $0x4a] sm:$0xff] }
 0x165   : > { %1611 = vmatmul.mubr.f32.gmra.mxu0 %v743_v35  ;;  %1631 = vmatprep.subr.mxu1 %v1010_v33 }
 0x166   : > { %1632 = vmatpush3.msra.mxu1 %v1010_v33 }
 0x167   : > { %1633 = vmatprep.subr.mxu1 %v1009_v36 }
 0x168   : > { %1634 = vmatpush3.msra.mxu1 %v1009_v36 }
 0x169   : > { %1635 = vmatprep.subr.mxu1 %v1008_v37 }
 0x16a   : > { %1636 = vmatpush3.msra.mxu1 %v1008_v37 }
 0x16b   : > { %1637 = vmatprep.subr.mxu1 %v1007_v38 }
 0x16c   : > { %1638 = vmatpush3.msra.mxu1 %v1007_v38 }
 0x16d   : > { %1639 = vmatprep.subr.mxu1 %v1006_v39 }
 0x16e   : > { %1640 = vmatpush3.msra.mxu1 %v1006_v39 }
 0x16f   : > { %1641 = vmatprep.subr.mxu1 %v1005_v40 }
 0x170   : > { %1642 = vmatpush3.msra.mxu1 %v1005_v40 }
 0x171   : > { %1643 = vmatprep.subr.mxu1 %v1004_v41 }
 0x172   : > { %1644 = vmatpush3.msra.mxu1 %v1004_v41 }
 0x173   : > { %1646 = vmatmul.mubr.f32.vlgmr.msra.gmra.mxu1 %v996_v42 }
 0x174   : > { %1648 = vmatprep.mubr.f32.mxu1 %v997_v43 }
 0x177   : > { %1649 = vmatmul.mubr.f32.gmra.mxu1 %v998_v44 }
 0x178   : > { %1651 = vmatprep.mubr.f32.mxu1 %v999_v45 }
 0x17b   : > { %1652 = vmatmul.mubr.f32.gmra.mxu1 %v1000_v46 }
 0x17c   : > { %1654 = vmatprep.mubr.f32.mxu1 %v1001_v47 }
 0x17f   : > { %1655 = vmatmul.mubr.f32.gmra.mxu1 %v1002_v48 }
 0x211   : > { %v1559_v49 = vpop.f32.mrf.mxu1 }
 0x213   : > { %v851_v50 = vpop.f32.mrf.mxu1 }
 0x215   : > { %v1562_v51 = vpop.f32.mrf.mxu1 }
 0x217   : > { %v861_v53 = vpop.f32.mrf.mxu1 }
 0x219   : > { %v1603_v52 = vpop.f32.mrf.mxu0 }
 0x21a   : > { %v1565_v55 = vpop.f32.mrf.mxu1  ;;  %v962_v62 = vadd.f32 %v1603_v52, %v1559_v49 }
 0x21b   : > { %v956_v54 = vpop.f32.mrf.mxu0 }
 0x21c   : > { %v871_v57 = vpop.f32.mrf.mxu1  ;;  %v957_v0 = vadd.f32 %v956_v54, %v851_v50 }
 0x21d   : > { %v1606_v56 = vpop.f32.mrf.mxu0 }
 0x21e   : > { %v972_v4 = vadd.f32 %v1606_v56, %v1562_v51 }
 0x21f   : > { %v966_v58 = vpop.f32.mrf.mxu0  ;;  %v1568_v59 = vpop.f32.mrf.mxu1 }
 0x220   : > { %v967_v7 = vadd.f32 %v966_v58, %v861_v53 }
 0x221   : > { %v1609_v60 = vpop.f32.mrf.mxu0  ;;  %v881_v61 = vpop.f32.mrf.mxu1 }
 0x222   : > { %v982_v13 = vadd.f32 %v1609_v60, %v1565_v55 }
 0x223   : > { %v976_v1 = vpop.f32.mrf.mxu0 }
 0x224   : > { %v977_v18 = vadd.f32 %v976_v1, %v871_v57 }
 0x225   : > { %v1612_v9 = vpop.f32.mrf.mxu0 }
 0x226   : > { %v992_v24 = vadd.f32 %v1612_v9, %v1568_v59 }
 0x227   : > { %v986_v20 = vpop.f32.mrf.mxu0 }
 0x228   : > { %v987_v29 = vadd.f32 %v986_v20, %v881_v61 }
 0x233   : > { %v1647_v63 = vpop.f32.mrf.mxu1 }
 0x234   : > { %v1126_v2 = vadd.f32 %v1647_v63, %v962_v62 }
 0x235   : > { %v1086_v3 = vpop.f32.mrf.mxu1 }
 0x236   : > { %vm1134_vm10 = vcmp.gt.f32.partialorder %v1126_v2, 0.0  ;;  %v1142_v5 = vmul.f32 0.1, %v1126_v2  ;;  %v1125_v6 = vadd.f32 %v1086_v3, %v957_v0 }
 0x237   : > { %v1650_v8 = vpop.f32.mrf.mxu1 }
 0x238   : > { %v1150_v10 = vsel %vm1134_vm10, %v1126_v2, %v1142_v5  ;;  %vm1133_vm11 = vcmp.gt.f32.partialorder %v1125_v6, 0.0  ;;  %v1141_v11 = vmul.f32 0.1, %v1125_v6  ;;  %v1128_v12 = vadd.f32 %v1650_v8, %v972_v4 }
 0x239   : > { %1158 = vst [vmem:[%s2059_s20 + $0x8] sm:$0xff] %v1150_v10  ;;  %v1096_v14 = vpop.f32.mrf.mxu1 }
 0x23a   : > { %v1149_v15 = vsel %vm1133_vm11, %v1125_v6, %v1141_v11  ;;  %vm1136_vm12 = vcmp.gt.f32.partialorder %v1128_v12, 0.0  ;;  %v1144_v16 = vmul.f32 0.1, %v1128_v12  ;;  %v1127_v17 = vadd.f32 %v1096_v14, %v967_v7 }
 0x23b   : > { %1157 = vst [vmem:[%s2059_s20] sm:$0xff] %v1149_v15  ;;  %v1653_v19 = vpop.f32.mrf.mxu1 }
 0x23c   : > { %v1152_v21 = vsel %vm1136_vm12, %v1128_v12, %v1144_v16  ;;  %vm1135_vm13 = vcmp.gt.f32.partialorder %v1127_v17, 0.0  ;;  %v1143_v22 = vmul.f32 0.1, %v1127_v17  ;;  %v1130_v23 = vadd.f32 %v1653_v19, %v982_v13 }
 0x23d   : > { %1160 = vst [vmem:[%s2059_s20 + $0x18] sm:$0xff] %v1152_v21  ;;  %v1106_v25 = vpop.f32.mrf.mxu1 }
 0x23e   : > { %v1151_v26 = vsel %vm1135_vm13, %v1127_v17, %v1143_v22  ;;  %vm1138_vm14 = vcmp.gt.f32.partialorder %v1130_v23, 0.0  ;;  %v1146_v27 = vmul.f32 0.1, %v1130_v23  ;;  %v1129_v28 = vadd.f32 %v1106_v25, %v977_v18 }
 0x23f   : > { %1159 = vst [vmem:[%s2059_s20 + $0x10] sm:$0xff] %v1151_v26  ;;  %v1656_v30 = vpop.f32.mrf.mxu1 }
 0x240   : > { %v1154_v31 = vsel %vm1138_vm14, %v1130_v23, %v1146_v27  ;;  %vm1137_vm15 = vcmp.gt.f32.partialorder %v1129_v28, 0.0  ;;  %v1145_v32 = vmul.f32 0.1, %v1129_v28  ;;  %v1132_v33 = vadd.f32 %v1656_v30, %v992_v24 }
 0x241   : > { %1162 = vst [vmem:[%s2059_s20 + $0x28] sm:$0xff] %v1154_v31  ;;  %v1116_v34 = vpop.f32.mrf.mxu1 }
 0x242   : > { %v1153_v35 = vsel %vm1137_vm15, %v1129_v28, %v1145_v32  ;;  %vm1140_vm0 = vcmp.gt.f32.partialorder %v1132_v33, 0.0  ;;  %v1148_v36 = vmul.f32 0.1, %v1132_v33  ;;  %v1131_v37 = vadd.f32 %v1116_v34, %v987_v29 }
 0x243   : > { %1161 = vst [vmem:[%s2059_s20 + $0x20] sm:$0xff] %v1153_v35 }
 0x244   : > { %v1156_v38 = vsel %vm1140_vm0, %v1132_v33, %v1148_v36  ;;  %vm1139_vm1 = vcmp.gt.f32.partialorder %v1131_v37, 0.0  ;;  %v1147_v39 = vmul.f32 0.1, %v1131_v37 }
 0x245   : > { %1164 = vst [vmem:[%s2059_s20 + $0x38] sm:$0xff] %v1156_v38 }
 0x246   : > { %v1155_v40 = vsel %vm1139_vm1, %v1131_v37, %v1147_v39 }
 0x247   : > { %1163 = vst [vmem:[%s2059_s20 + $0x30] sm:$0xff] %v1155_v40 }
 0x248   : > { %1822 = shalt.err (!%p1819_p12)
}
 0x249   : > { %s1823_s17 = scalar_lea.hbm %s2118_s29, 1024  ;;  %s1827_s26 = scalar_lea.hbm %s2168_s3, 2048 }
 0x24a   : > { %p1824_p10 = scmp.ne.s32.totalorder %s2118_s29, %s1823_s17  ;;  %p1828_p6 = scmp.lt.s32.totalorder %s2118_s29, %s2168_s3 }
 0x24b   : > { %p1829_p9 = scmp.lt.s32.totalorder %s1827_s26, %s1823_s17 }
 0x24c   : > { %p1825_p1 = pnand %p1824_p10, %p2184_p7 }
 0x24d   : > { %p1830_p11 = por %p1829_p9, %p1828_p6 }
 0x24e   : > { %p1826_p4 = pneg %p1825_p1 }
 0x250   : > { %p1831_p2 = pnand %p1830_p11, %p1826_p4 }
 0x252   : > { %1834 = shalt.err (!%p1831_p2)
}
 0x253   : > { %s1886_s9 = smov 128   ;;  %s1887_s20 = smov 8  }
 0x254   : > { %1667 = dma.vmem_to_hbm [thread:$0]  (%p2184_p7), %s2120_s27, 1024, %s2118_s29, %s1166_s16, %s1886_s9, %s1886_s9, %s1887_s20  }
 0x255 PF: > { %s1195_s18 = sand.u32 1, %s1865_s12   ;;  %p2185_p13 = scmp.ne.s32.totalorder %s2174_s19, 0 }
 0x256   : > { %p2186_p0 = scmp.ge.s32.totalorder %s1877_s15, 2  ;;  %s1196_s28 = scalar_lea.sflag [#allocation6], %s1195_s18 }
 0x258   : > { %p1681_p3 = pnand %p2186_p0, %p2185_p13 }
 0x25a   : > { %p1682_p8 = pneg %p1681_p3 }
 0x25c   : > { %1860 = dma.done.wait (%p1682_p8), %s1196_s28, 1024  }
 0x25d   : > { %1862 = vsyncadd (%p1682_p8), %s1196_s28, 4294966272  ;;  %p17_p5 = scmp.ge.s32.totalorder %s1987_s7, 4   ;;  %s2187_s12 = smov %s1869_s13 }
 0x25e   : > { %s2188_s13 = smov %s1873_s14  ;;  %s2189_s14 = smov %s2003_s11 }
 0x25f   : > { %s2190_s15 = smov %s1987_s7  ;;  %19 = sbr.rel (!%p17_p5) target bundleno = 6 (0x6), region = 93 }
 0x264   :  { %1201 = vsyncpa [#allocation5], 1 }
 0x265   :  { %1203 = vsyncpa [#allocation5 + $0x1], 1 }
 0x266   :  { %1204 = vsyncpa [#allocation8], 1 }
 0x267   :  { %1205 = vsyncpa [#allocation6], 1 }
 0x268   :  { %1207 = vsyncpa [#allocation6 + $0x1], 1 }

</bundles_post_ra>
